<compile_context>
chip_gen: v7x
topology: tpu7x:2x2x1
jax: 0.10.0
libtpu: 0.0.40
codegen_flags: <defaults>
</compile_context>

<pallas_src>
import functools

import jax
import jax.numpy as jnp
from jax import lax
from jax.experimental import pallas as pl
from jax.experimental.pallas import tpu as pltpu
import numpy as np


def _yolo_decode_kernel(anchor_ref, x_ref, o_ref, *, grid_size, stride):
    """Decode one (batch, lane-chunk) slab.

    x_ref: (1, A, Cp, Nb) raw logits  ->  o_ref: (1, A, Nb, Cp) decoded boxes.
    anchor_ref: (A, 2) f32 in SMEM (scalar prefetch).  Note anchor_wh * stride
    == raw anchor sizes, so the w/h scale is just the anchor itself.
    """
    _, A, Cp, Nb = x_ref.shape
    hdr = min(Cp, 8)                       # box rows live in the first 8 sublanes
    s = jnp.float32(stride)

    # --- spatial coordinates for this lane chunk (f32, no int div/mod) ------
    n0 = pl.program_id(1) * Nb             # flat spatial offset of this chunk
    lane = lax.broadcasted_iota(jnp.int32, (1, Nb), 1)
    idxf = (lane + n0).astype(jnp.float32)              # exact: idx < 2^24
    # gy = floor(idx / G).  The +0.5 keeps the product at least 0.5/G away from
    # any integer, which is >> f32 rounding error for any realistic YOLO grid,
    # so the floor is exact without integer division.
    gy = jnp.floor((idxf + 0.5) * jnp.float32(1.0 / grid_size))
    gx = idxf - gy * jnp.float32(grid_size)
    gxs = gx * s                                         # (1, Nb)
    gys = gy * s

    # --- per-row (channel) decode tables, anchor independent (hoisted) ------
    rowc = lax.broadcasted_iota(jnp.int32, (hdr, 1), 0)              # (hdr, 1)
    is_wh = (rowc == 3) | (rowc == 4)                                # rows w,h
    xy_scale = jnp.where((rowc == 1) | (rowc == 2), s, jnp.float32(1.0))
    xy_off = jnp.where(rowc == 1, gxs,
                       jnp.where(rowc == 2, gys, jnp.float32(0.0)))  # (hdr, Nb)

    for a in range(A):                      # static unroll, A is small
        aw = anchor_ref[a, 0]
        ah = anchor_ref[a, 1]
        wh_scale = jnp.where(rowc == 3, aw, ah)          # (hdr, 1)

        head = x_ref[0, a, 0:hdr, :]                     # (hdr, Nb)
        sig = jax.nn.sigmoid(head)                       # EUP
        ex = jnp.exp(head)                               # EUP, only rows 3,4 kept
        # obj/x/y/cls: sigmoid*scale+offset ; w/h: exp*anchor   (single select)
        box = jnp.where(is_wh, ex * wh_scale, sig * xy_scale + xy_off)

        if Cp > hdr:
            # remaining class rows: plain sigmoid only (no exp / decode math).
            cls = jax.nn.sigmoid(x_ref[0, a, hdr:Cp, :])
            dec = jnp.concatenate([box, cls], axis=0)    # (Cp, Nb)
        else:
            dec = box

        # Transpose on the XLU so HBM already holds the (N, Cp) layout and the
        # wrapper needs no extra transpose pass over the output.
        o_ref[0, a] = jnp.transpose(dec)                 # (Nb, Cp)


def yolo_layer_forward(x_nchw, anchors, stride, class_num, training=False):
    """JAX/Pallas equivalent of YOLOLayer.forward.

    x_nchw: (B, A * (5 + class_num), G, G) float32   (NCHW conv output)
    anchors: (A, 2) float32
    returns:
      training=True : (B, A, G, G, Cp)   (pure reshape/permute, no compute)
      training=False: (B, A*G*G, Cp)     (decoded boxes, Pallas kernel)
    """
    B, C, G, _ = x_nchw.shape
    A = anchors.shape[0]
    Cp = 5 + class_num
    assert C == A * Cp
    N = G * G

    # NCHW contiguous view -> (B, A, Cp, N): matches x.view(B, A, -1, G, G)
    x5 = x_nchw.reshape(B, A, Cp, N)

    if training:
        # training path is just a reshape/permute in the reference module.
        return x5.reshape(B, A, Cp, G, G).transpose(0, 1, 3, 4, 2)

    # Keep the lane axis dense: pad N up to a multiple of 128 if needed
    # (real YOLO grids 13/26/52 give N = 169/676/2704).
    Np = -(-N // 128) * 128
    if Np != N:
        x5 = jnp.pad(x5, ((0, 0), (0, 0), (0, 0), (0, Np - N)))

    # Lane-chunking: largest chunk whose double-buffered in+out blocks fit a
    # conservative 24 MiB budget, so the kernel stays within a 32 MiB scoped
    # VMEM limit on every generation (v7x: 64 MiB physical, v5e: 16 MiB default).
    cp_sub = -(-Cp // 8) * 8        # sublane-padded channels (input block)
    cp_lane = -(-Cp // 128) * 128   # lane-padded channels (transposed output block)
    budget = 24 * 1024 * 1024

    def _blocks_bytes(t):           # double-buffered input + output blocks
        return 2 * 4 * (A * cp_sub * t + A * t * cp_lane)

    tile_n = Np
    while _blocks_bytes(tile_n) > budget and tile_n % 256 == 0:
        tile_n //= 2
    n_chunks = Np // tile_n

    anchor_tbl = anchors.astype(jnp.float32)   # (A, 2) -> SMEM via scalar prefetch

    kernel = functools.partial(_yolo_decode_kernel, grid_size=G, stride=float(stride))

    out = pl.pallas_call(
        kernel,
        out_shape=jax.ShapeDtypeStruct((B, A, Np, Cp), jnp.float32),
        grid_spec=pltpu.PrefetchScalarGridSpec(
            num_scalar_prefetch=1,                          # anchors -> SMEM
            grid=(B, n_chunks),
            in_specs=[
                pl.BlockSpec((1, A, Cp, tile_n), lambda b, n, anc: (b, 0, 0, n)),
            ],
            out_specs=pl.BlockSpec((1, A, tile_n, Cp), lambda b, n, anc: (b, 0, n, 0)),
        ),
        compiler_params=pltpu.CompilerParams(
            # batch axis parallel so v7x's second TensorCore gets work
            dimension_semantics=("parallel", "parallel"),
            vmem_limit_bytes=32 * 1024 * 1024,
        ),
    )(anchor_tbl, x5)

    if Np != N:
        out = out[:, :, :N, :]
    # (B, A, N, Cp) -> (B, A*G*G, Cp): contiguous merge of adjacent dims, free.
    return out.reshape(B, A * N, Cp)


def _reference_decode(x_nchw, anchors, stride, class_num):
    """Pure-JAX re-implementation of the PyTorch decoder for verification."""
    B, C, G, _ = x_nchw.shape
    A = anchors.shape[0]
    Cp = 5 + class_num
    # (B, A, Cp, G, G) -> permute -> (B, A, G, G, Cp)
    t = x_nchw.reshape(B, A, Cp, G, G).transpose(0, 1, 3, 4, 2)

    yy, xx = jnp.meshgrid(jnp.arange(G), jnp.arange(G), indexing="ij")
    grid_xy = jnp.stack((xx, yy), axis=2).reshape(1, 1, G, G, 2).astype(jnp.float32)
    anchor_wh = (anchors / float(stride)).reshape(1, A, 1, 1, 2)

    obj = jax.nn.sigmoid(t[..., 0:1])
    xy = (jax.nn.sigmoid(t[..., 1:3]) + grid_xy) * float(stride)
    wh = jnp.exp(t[..., 3:5]) * anchor_wh * float(stride)
    cls = jax.nn.sigmoid(t[..., 5:])
    out = jnp.concatenate([obj, xy, wh, cls], axis=-1)
    return out.reshape(B, -1, Cp)


if __name__ == "__main__":
    # Deterministic config (mirrors cfg in __init__): 3 anchors, 3 classes,
    # stride 8, grid 16  ->  img_size = 128, per-anchor channels Cp = 8.
    class_num = 3
    stride = 8
    grid = 16
    anchors = jnp.array([[10.0, 13.0], [16.0, 30.0], [33.0, 23.0]], dtype=jnp.float32)
    A = anchors.shape[0]
    Cp = 5 + class_num

    B = 2
    key = jax.random.PRNGKey(0)
    x = jax.random.normal(key, (B, A * Cp, grid, grid), dtype=jnp.float32)

    y = yolo_layer_forward(x, anchors, stride, class_num, training=False)
    y = jax.block_until_ready(y)

    y_ref = jax.block_until_ready(_reference_decode(x, anchors, stride, class_num))
    assert y.shape == (B, A * grid * grid, Cp), y.shape
    np.testing.assert_allclose(np.asarray(y), np.asarray(y_ref), rtol=1e-5, atol=1e-5)

    print("KERNEL_OK")
</pallas_src>

<mosaic_0001>
module attributes {stable_mosaic.version = 11 : i64} {
  func.func @_yolo_decode_kernel(%arg0: i32, %arg1: i32, %arg2: memref<3x2xf32, #tpu.memory_space<smem>>, %arg3: memref<1x3x8x256xf32, #tpu.memory_space<vmem>>, %arg4: memref<1x3x256x8xf32, #tpu.memory_space<vmem>>) attributes {dimension_semantics = [#tpu.dimension_semantics<parallel>, #tpu.dimension_semantics<parallel>], iteration_bounds = array<i64: 2, 1>, scalar_prefetch = 1 : i64, scratch_operands = 0 : i64, tpu.core_type = #tpu.core_type<tc>, window_params = [{transform_indices = @transform_0, window_bounds = array<i64: 1, 3, 8, 256>}, {transform_indices = @transform_1, window_bounds = array<i64: 1, 3, 256, 8>}]} {
    %c256_i32 = arith.constant 256 : i32
    %0 = arith.muli %arg1, %c256_i32 : i32
    %1 = tpu.iota {dimensions = array<i32: 1>} : vector<1x256xi32>
    %2 = vector.broadcast %0 : i32 to vector<1x256xi32>
    %3 = arith.addi %1, %2 : vector<1x256xi32>
    %4 = arith.sitofp %3 : vector<1x256xi32> to vector<1x256xf32>
    %cst = arith.constant 5.000000e-01 : f32
    %5 = vector.broadcast %cst : f32 to vector<1x256xf32>
    %6 = arith.addf %4, %5 : vector<1x256xf32>
    %cst_0 = arith.constant 6.250000e-02 : f32
    %7 = vector.broadcast %cst_0 : f32 to vector<1x256xf32>
    %8 = arith.mulf %6, %7 : vector<1x256xf32>
    %9 = math.floor %8 : vector<1x256xf32>
    %cst_1 = arith.constant 1.600000e+01 : f32
    %10 = vector.broadcast %cst_1 : f32 to vector<1x256xf32>
    %11 = arith.mulf %9, %10 : vector<1x256xf32>
    %12 = arith.subf %4, %11 : vector<1x256xf32>
    %cst_2 = arith.constant 8.000000e+00 : f32
    %13 = vector.broadcast %cst_2 : f32 to vector<1x256xf32>
    %14 = arith.mulf %12, %13 : vector<1x256xf32>
    %cst_3 = arith.constant 8.000000e+00 : f32
    %15 = vector.broadcast %cst_3 : f32 to vector<1x256xf32>
    %16 = arith.mulf %9, %15 : vector<1x256xf32>
    %17 = tpu.iota {dimensions = array<i32: 0>} : vector<8x1xi32>
    %c3_i32 = arith.constant 3 : i32
    %18 = vector.broadcast %c3_i32 : i32 to vector<8x1xi32>
    %19 = arith.cmpi eq, %17, %18 : vector<8x1xi32>
    %c4_i32 = arith.constant 4 : i32
    %20 = vector.broadcast %c4_i32 : i32 to vector<8x1xi32>
    %21 = arith.cmpi eq, %17, %20 : vector<8x1xi32>
    %22 = arith.ori %19, %21 : vector<8x1xi1>
    %c1_i32 = arith.constant 1 : i32
    %23 = vector.broadcast %c1_i32 : i32 to vector<8x1xi32>
    %24 = arith.cmpi eq, %17, %23 : vector<8x1xi32>
    %c2_i32 = arith.constant 2 : i32
    %25 = vector.broadcast %c2_i32 : i32 to vector<8x1xi32>
    %26 = arith.cmpi eq, %17, %25 : vector<8x1xi32>
    %27 = arith.ori %24, %26 : vector<8x1xi1>
    %cst_4 = arith.constant 8.000000e+00 : f32
    %cst_5 = arith.constant 1.000000e+00 : f32
    %28 = vector.broadcast %cst_4 : f32 to vector<8x1xf32>
    %29 = vector.broadcast %cst_5 : f32 to vector<8x1xf32>
    %30 = arith.select %27, %28, %29 : vector<8x1xi1>, vector<8x1xf32>
    %c1_i32_6 = arith.constant 1 : i32
    %31 = vector.broadcast %c1_i32_6 : i32 to vector<8x1xi32>
    %32 = arith.cmpi eq, %17, %31 : vector<8x1xi32>
    %c2_i32_7 = arith.constant 2 : i32
    %33 = vector.broadcast %c2_i32_7 : i32 to vector<8x1xi32>
    %34 = arith.cmpi eq, %17, %33 : vector<8x1xi32>
    %cst_8 = arith.constant 0.000000e+00 : f32
    %35 = vector.shape_cast %34 : vector<8x1xi1> to vector<8x1xi1>
    %36 = vector.broadcast %35 : vector<8x1xi1> to vector<8x256xi1>
    %37 = vector.shape_cast %16 : vector<1x256xf32> to vector<1x256xf32>
    %38 = vector.broadcast %37 : vector<1x256xf32> to vector<8x256xf32>
    %39 = vector.broadcast %cst_8 : f32 to vector<8x256xf32>
    %40 = arith.select %36, %38, %39 : vector<8x256xi1>, vector<8x256xf32>
    %41 = vector.shape_cast %32 : vector<8x1xi1> to vector<8x1xi1>
    %42 = vector.broadcast %41 : vector<8x1xi1> to vector<8x256xi1>
    %43 = vector.shape_cast %14 : vector<1x256xf32> to vector<1x256xf32>
    %44 = vector.broadcast %43 : vector<1x256xf32> to vector<8x256xf32>
    %45 = arith.select %42, %44, %40 : vector<8x256xi1>, vector<8x256xf32>
    %c0 = arith.constant 0 : index
    %c0_9 = arith.constant 0 : index
    %46 = memref.load %arg2[%c0, %c0_9] : memref<3x2xf32, #tpu.memory_space<smem>>
    %c0_10 = arith.constant 0 : index
    %c1 = arith.constant 1 : index
    %47 = memref.load %arg2[%c0_10, %c1] : memref<3x2xf32, #tpu.memory_space<smem>>
    %c3_i32_11 = arith.constant 3 : i32
    %48 = vector.broadcast %c3_i32_11 : i32 to vector<8x1xi32>
    %49 = arith.cmpi eq, %17, %48 : vector<8x1xi32>
    %50 = vector.broadcast %46 : f32 to vector<8x1xf32>
    %51 = vector.broadcast %47 : f32 to vector<8x1xf32>
    %52 = arith.select %49, %50, %51 : vector<8x1xi1>, vector<8x1xf32>
    %c0_12 = arith.constant 0 : index
    %c0_13 = arith.constant 0 : index
    %c0_14 = arith.constant 0 : index
    %c0_15 = arith.constant 0 : index
    %53 = vector.load %arg3[%c0_12, %c0_13, %c0_14, %c0_15] : memref<1x3x8x256xf32, #tpu.memory_space<vmem>>, vector<1x1x8x256xf32>
    %54 = vector.shape_cast %53 : vector<1x1x8x256xf32> to vector<8x256xf32>
    %55 = arith.negf %54 : vector<8x256xf32>
    %56 = math.exp %55 : vector<8x256xf32>
    %cst_16 = arith.constant 1.000000e+00 : f32
    %57 = vector.broadcast %cst_16 : f32 to vector<8x256xf32>
    %58 = arith.addf %57, %56 : vector<8x256xf32>
    %59 = arith.divf %57, %58 : vector<8x256xf32>
    %60 = math.exp %54 : vector<8x256xf32>
    %61 = vector.broadcast %52 : vector<8x1xf32> to vector<8x256xf32>
    %62 = arith.mulf %60, %61 : vector<8x256xf32>
    %63 = vector.broadcast %30 : vector<8x1xf32> to vector<8x256xf32>
    %64 = arith.mulf %59, %63 : vector<8x256xf32>
    %65 = arith.addf %64, %45 : vector<8x256xf32>
    %66 = vector.shape_cast %22 : vector<8x1xi1> to vector<8x1xi1>
    %67 = vector.broadcast %66 : vector<8x1xi1> to vector<8x256xi1>
    %68 = arith.select %67, %62, %65 : vector<8x256xi1>, vector<8x256xf32>
    %69 = tpu.transpose %68, [1, 0] : vector<8x256xf32> -> vector<256x8xf32>
    %c0_17 = arith.constant 0 : index
    %c0_18 = arith.constant 0 : index
    %c0_19 = arith.constant 0 : index
    %c0_20 = arith.constant 0 : index
    %70 = vector.load %arg4[%c0_17, %c0_18, %c0_19, %c0_20] : memref<1x3x256x8xf32, #tpu.memory_space<vmem>>, vector<1x1x256x8xf32>
    %71 = vector.shape_cast %70 : vector<1x1x256x8xf32> to vector<256x8xf32>
    %72 = vector.shape_cast %69 : vector<256x8xf32> to vector<1x1x256x8xf32>
    tpu.vector_store %arg4[%c0_17, %c0_18, %c0_19, %c0_20], %72 {strides = array<i32>} : memref<1x3x256x8xf32, #tpu.memory_space<vmem>>, vector<1x1x256x8xf32>,
    %c1_21 = arith.constant 1 : index
    %c0_22 = arith.constant 0 : index
    %73 = memref.load %arg2[%c1_21, %c0_22] : memref<3x2xf32, #tpu.memory_space<smem>>
    %c1_23 = arith.constant 1 : index
    %c1_24 = arith.constant 1 : index
    %74 = memref.load %arg2[%c1_23, %c1_24] : memref<3x2xf32, #tpu.memory_space<smem>>
    %c3_i32_25 = arith.constant 3 : i32
    %75 = vector.broadcast %c3_i32_25 : i32 to vector<8x1xi32>
    %76 = arith.cmpi eq, %17, %75 : vector<8x1xi32>
    %77 = vector.broadcast %73 : f32 to vector<8x1xf32>
    %78 = vector.broadcast %74 : f32 to vector<8x1xf32>
    %79 = arith.select %76, %77, %78 : vector<8x1xi1>, vector<8x1xf32>
    %c0_26 = arith.constant 0 : index
    %c1_27 = arith.constant 1 : index
    %c0_28 = arith.constant 0 : index
    %c0_29 = arith.constant 0 : index
    %80 = vector.load %arg3[%c0_26, %c1_27, %c0_28, %c0_29] : memref<1x3x8x256xf32, #tpu.memory_space<vmem>>, vector<1x1x8x256xf32>
    %81 = vector.shape_cast %80 : vector<1x1x8x256xf32> to vector<8x256xf32>
    %82 = arith.negf %81 : vector<8x256xf32>
    %83 = math.exp %82 : vector<8x256xf32>
    %cst_30 = arith.constant 1.000000e+00 : f32
    %84 = vector.broadcast %cst_30 : f32 to vector<8x256xf32>
    %85 = arith.addf %84, %83 : vector<8x256xf32>
    %86 = arith.divf %84, %85 : vector<8x256xf32>
    %87 = math.exp %81 : vector<8x256xf32>
    %88 = vector.broadcast %79 : vector<8x1xf32> to vector<8x256xf32>
    %89 = arith.mulf %87, %88 : vector<8x256xf32>
    %90 = vector.broadcast %30 : vector<8x1xf32> to vector<8x256xf32>
    %91 = arith.mulf %86, %90 : vector<8x256xf32>
    %92 = arith.addf %91, %45 : vector<8x256xf32>
    %93 = vector.shape_cast %22 : vector<8x1xi1> to vector<8x1xi1>
    %94 = vector.broadcast %93 : vector<8x1xi1> to vector<8x256xi1>
    %95 = arith.select %94, %89, %92 : vector<8x256xi1>, vector<8x256xf32>
    %96 = tpu.transpose %95, [1, 0] : vector<8x256xf32> -> vector<256x8xf32>
    %c0_31 = arith.constant 0 : index
    %c1_32 = arith.constant 1 : index
    %c0_33 = arith.constant 0 : index
    %c0_34 = arith.constant 0 : index
    %97 = vector.load %arg4[%c0_31, %c1_32, %c0_33, %c0_34] : memref<1x3x256x8xf32, #tpu.memory_space<vmem>>, vector<1x1x256x8xf32>
    %98 = vector.shape_cast %97 : vector<1x1x256x8xf32> to vector<256x8xf32>
    %99 = vector.shape_cast %96 : vector<256x8xf32> to vector<1x1x256x8xf32>
    tpu.vector_store %arg4[%c0_31, %c1_32, %c0_33, %c0_34], %99 {strides = array<i32>} : memref<1x3x256x8xf32, #tpu.memory_space<vmem>>, vector<1x1x256x8xf32>,
    %c2 = arith.constant 2 : index
    %c0_35 = arith.constant 0 : index
    %100 = memref.load %arg2[%c2, %c0_35] : memref<3x2xf32, #tpu.memory_space<smem>>
    %c2_36 = arith.constant 2 : index
    %c1_37 = arith.constant 1 : index
    %101 = memref.load %arg2[%c2_36, %c1_37] : memref<3x2xf32, #tpu.memory_space<smem>>
    %c3_i32_38 = arith.constant 3 : i32
    %102 = vector.broadcast %c3_i32_38 : i32 to vector<8x1xi32>
    %103 = arith.cmpi eq, %17, %102 : vector<8x1xi32>
    %104 = vector.broadcast %100 : f32 to vector<8x1xf32>
    %105 = vector.broadcast %101 : f32 to vector<8x1xf32>
    %106 = arith.select %103, %104, %105 : vector<8x1xi1>, vector<8x1xf32>
    %c0_39 = arith.constant 0 : index
    %c2_40 = arith.constant 2 : index
    %c0_41 = arith.constant 0 : index
    %c0_42 = arith.constant 0 : index
    %107 = vector.load %arg3[%c0_39, %c2_40, %c0_41, %c0_42] : memref<1x3x8x256xf32, #tpu.memory_space<vmem>>, vector<1x1x8x256xf32>
    %108 = vector.shape_cast %107 : vector<1x1x8x256xf32> to vector<8x256xf32>
    %109 = arith.negf %108 : vector<8x256xf32>
    %110 = math.exp %109 : vector<8x256xf32>
    %cst_43 = arith.constant 1.000000e+00 : f32
    %111 = vector.broadcast %cst_43 : f32 to vector<8x256xf32>
    %112 = arith.addf %111, %110 : vector<8x256xf32>
    %113 = arith.divf %111, %112 : vector<8x256xf32>
    %114 = math.exp %108 : vector<8x256xf32>
    %115 = vector.broadcast %106 : vector<8x1xf32> to vector<8x256xf32>
    %116 = arith.mulf %114, %115 : vector<8x256xf32>
    %117 = vector.broadcast %30 : vector<8x1xf32> to vector<8x256xf32>
    %118 = arith.mulf %113, %117 : vector<8x256xf32>
    %119 = arith.addf %118, %45 : vector<8x256xf32>
    %120 = vector.shape_cast %22 : vector<8x1xi1> to vector<8x1xi1>
    %121 = vector.broadcast %120 : vector<8x1xi1> to vector<8x256xi1>
    %122 = arith.select %121, %116, %119 : vector<8x256xi1>, vector<8x256xf32>
    %123 = tpu.transpose %122, [1, 0] : vector<8x256xf32> -> vector<256x8xf32>
    %c0_44 = arith.constant 0 : index
    %c2_45 = arith.constant 2 : index
    %c0_46 = arith.constant 0 : index
    %c0_47 = arith.constant 0 : index
    %124 = vector.load %arg4[%c0_44, %c2_45, %c0_46, %c0_47] : memref<1x3x256x8xf32, #tpu.memory_space<vmem>>, vector<1x1x256x8xf32>
    %125 = vector.shape_cast %124 : vector<1x1x256x8xf32> to vector<256x8xf32>
    %126 = vector.shape_cast %123 : vector<256x8xf32> to vector<1x1x256x8xf32>
    tpu.vector_store %arg4[%c0_44, %c2_45, %c0_46, %c0_47], %126 {strides = array<i32>} : memref<1x3x256x8xf32, #tpu.memory_space<vmem>>, vector<1x1x256x8xf32>,
    return
  }
  func.func @transform_0(%arg0: i32, %arg1: i32, %arg2: memref<3x2xf32, #tpu.memory_space<smem>>) -> (i32, i32, i32, i32) {
    %c0_i32 = arith.constant 0 : i32
    %c0_i32_0 = arith.constant 0 : i32
    %c0_i32_1 = arith.constant 0 : i32
    return %arg0, %c0_i32, %c0_i32_0, %arg1 : i32, i32, i32, i32
  }
  func.func @transform_1(%arg0: i32, %arg1: i32, %arg2: memref<3x2xf32, #tpu.memory_space<smem>>) -> (i32, i32, i32, i32) {
    %c0_i32 = arith.constant 0 : i32
    %c0_i32_0 = arith.constant 0 : i32
    %c0_i32_1 = arith.constant 0 : i32
    return %arg0, %c0_i32, %arg1, %c0_i32_0 : i32, i32, i32, i32
  }
}

</mosaic_0001>

<bundles_post_ra>
// kernel: tpu_custom_call.1
= control target key start
LH: loop header
LB: loop body
LE: loop exit
PB: predicated region body
PF: predicated region fallthrough
CT: control target
= control target key end

     0   :  { %s1401_s0 = inlined_call_operand.vmem [shape: f32[3,2], index: 0, kind: input, shape index: {}]   ;;  %s1402_s1 = inlined_call_operand.hbm [shape: f32[2,3,8,256], index: 1, kind: input, shape index: {}]   ;;  %s1403_s2 = inlined_call_operand.vmem [shape: f32[2,3,256,8], index: 2, kind: output, shape index: {}]  }
   0x1   :  { %s7_s11 = sshll.u32 %s1401_s0, 4  ;;  %s8_s11 = int_to_ptr.vmem [resolvable:$true] %s7_s11 }
   0x2   :  { %s883_s12 = scalar_lea.vmem %s8_s11, 64  ;;  %p888_p1 = scmp.lt.s32.totalorder %s8_s11, %s8_s11 }
   0x3   :  { %p884_p0 = scmp.ne.s32.totalorder %s8_s11, %s883_s12  ;;  %p889_p2 = scmp.lt.s32.totalorder %s883_s12, %s883_s12 }
   0x5   :  { %p890_p3 = por %p889_p2, %p888_p1 }
   0x7   :  { %p891_p4 = pnand %p890_p3, %p884_p0 }
   0x9   :  { %894 = shalt.err (!%p891_p4)  }
   0xa   :  { %s979_s13 = smov [#allocation3]  }
   0xb   :  { %10 = dma.vmem_to_smem %s8_s11, 64, %s979_s13, [#allocation2] }
   0xc   :  { %949 = dma.done.wait [#allocation2], 64 }
   0xd   :  { %950 = vsyncadd [#allocation2], 4294967232 }
   0xe   :  { %12 = sfence }
   0xf   :  { %13 = vsyncpa [#allocation5], 0 }
  0x10   :  { %15 = vsyncpa [#allocation5 + $0x1], 0  ;;  %s1002_s14 = smov 0   ;;  %s1004_s15 = smov 0  }
  0x11   :  { %s1006_s0 = smov 0   ;;  %s1008_s16 = smov 0  }
  0x12   :  { %s1010_s17 = smov 0   ;;  %s1012_s18 = smov 0  }
  0x13 LB: > { %s695_s19 = sadd.s32 4294967295, %s977_s18   ;;  %s33_s20 = sadd.s32 1, %s973_s17  ;;  %s977_s18 = sphi %s1012_s18, %s21_s18   ;;  %s973_s17 = sphi %s1010_s17, %s1412_s17   ;;  %s969_s16 = sphi %s1008_s16, %s1411_s16   ;;  %s965_s0 = sphi %s1006_s0, %s1410_s0   ;;  %s961_s15 = sphi %s1004_s15, %s1409_s15   ;;  %s957_s14 = sphi %s1002_s14, %s1408_s14  }
  0x14   : > { %p35_p5 = scmp.ge.s32.totalorder %s33_s20, 2  ;;  %s42_s21 = sadd.s32 1, %s965_s0 }
  0x15   : > { %p49_p6 = scmp.ne.s32.totalorder %s965_s0, %s961_s15  ;;  %p50_p7 = scmp.eq.s32.totalorder %s977_s18, 0 }
  0x16   : > { %s1414_s20 = smov (%p35_p5, %s33_s20), 0  ;;  %p55_p9 = scmp.ne.s32.totalorder %s961_s15, %s957_s14 }
  0x17   : > { %p51_p8 = por %p50_p7, %p49_p6  ;;  %s37_s22 = ssub.s32 %s973_s17, %s1414_s20 }
  0x18   : > { %p56_p10 = scmp.eq.s32.totalorder %s695_s19, 0  ;;  %p40_p11 = scmp.eq.s32.totalorder %s37_s22, 0 }
  0x19   : > { %p793_p13 = scmp.lt.s32.totalorder %s977_s18, 2  ;;  %s107_s25 = sand.u32 1, %s965_s0  }
  0x1a   : > { %p1041_p12 = por %p56_p10, %p55_p9  ;;  %s784_s26 = smul.u32 768, %s973_s17 }
  0x1b   : > { %s1047_s24 = scalar_select %p40_p11, %s965_s0, %s42_s21  }
  0x1c   : > { %s783_s27 = smul.u32 48, %s107_s25  ;;  %s1054_s30 = scalar_lea.hbm %s1402_s1, %s784_s26 }
  0x1d   : > { %p1056_p0 = pnand %p793_p13, %p51_p8  ;;  %s1062_s6 = scalar_lea.sflag [#allocation5], %s107_s25 }
  0x1e   : > { %s111_s4 = scalar_lea.vmem [#allocation4], %s783_s27  ;;  %s895_s7 = scalar_lea.hbm %s1054_s30, 768 }
  0x1f   : > { %s120_s5 = sshll.u32 %s111_s4, 4  ;;  %p896_p1 = scmp.ne.s32.totalorder %s1054_s30, %s895_s7  ;;  %s1060_s5 = int_to_ptr.vmem [resolvable:$true] %s120_s5 }
  0x20   : > { %p897_p2 = pneg %p1056_p0  ;;  %s900_s10 = scalar_lea.hbm %s1402_s1, 1536 }
  0x21   : > { %p901_p5 = scmp.lt.u32.totalorder %s1054_s30, %s1402_s1  ;;  %p902_p6 = scmp.lt.u32.totalorder %s900_s10, %s895_s7 }
  0x22   : > { %p898_p3 = pnand %p897_p2, %p896_p1  ;;  %p904_p8 = scmp.lt.u32.totalorder %s895_s7, %s1054_s30 }
  0x23   : > { %p903_p7 = por %p902_p6, %p901_p5 }
  0x24   : > { %p899_p4 = pneg %p898_p3 }
  0x25   : > { %p905_p9 = por %p904_p8, %p903_p7 }
  0x27   : > { %p906_p10 = pnand %p905_p9, %p899_p4 }
  0x29   : > { %909 = shalt.err (!%p906_p10)
}
  0x2a   : > { %s910_s13 = scalar_lea.vmem %s1060_s5, 768  ;;  %s980_s14 = smov [#allocation4]  }
  0x2b   : > { %p911_p11 = scmp.ne.s32.totalorder %s1060_s5, %s910_s13  ;;  %s915_s19 = sshll.u32 %s980_s14, 4  ;;  %s916_s19 = int_to_ptr.vmem [resolvable:$false] %s915_s19 }
  0x2c   : > { %s917_s21 = scalar_lea.vmem %s916_s19, 1536  ;;  %p918_p3 = scmp.lt.s32.totalorder %s1060_s5, %s916_s19 }
  0x2d   : > { %p913_p13 = pnand %p911_p11, %p897_p2  ;;  %p919_p5 = scmp.lt.s32.totalorder %s917_s21, %s910_s13 }
  0x2f   : > { %p914_p1 = pneg %p913_p13  ;;  %p920_p6 = por %p919_p5, %p918_p3 }
  0x31   : > { %p921_p7 = pnand %p920_p6, %p914_p1 }
  0x33   : > { %924 = shalt.err (!%p921_p7)
}
  0x34   : > { %s981_s22 = smov 256   ;;  %s982_s25 = smov 16  }
  0x35   : > { %792 = dma.hbm_to_vmem [thread:$0]  (!%p1056_p0), %s1054_s30, 768, %s1060_s5, %s1062_s6, %s981_s22, %s981_s22, %s982_s25  }
  0x36   : > { %p700_p2 = scmp.ge.s32.totalorder %s977_s18, 1  ;;  %p128_p4 = scmp.lt.s32.totalorder %s977_s18, 3 }
  0x38   : > { %p129_p8 = pnand %p700_p2, %p128_p4 }
  0x39   : > { %s134_s26 = sand.u32 (!%p129_p8), 1, %s961_s15  }
  0x3a   : > { %132 = sbr.rel (%p129_p8) target bundleno = 417 (0x1a1), region = 24  ;;  %s135_s28 = scalar_lea.sflag (!%p129_p8), [#allocation5], %s134_s26 }
  0x3b   : > { %s785_s27 = smul.u32 (!%p129_p8), 48, %s134_s26 }
  0x3d   : > { %s1093_s29 = scalar_lea.vmem (!%p129_p8), [#allocation4], %s785_s27 }
  0x41   : > { %952 = dma.done.wait (%p1041_p12), %s135_s28, 768  }
  0x42   : > { %954 = vsyncadd (%p1041_p12), %s135_s28, 4294966528  ;;  %v173_v0 = vlaneseq  ;;  %v707_v3 = vld [vmem:[%s1093_s29 + $0x10] sm:$0xff]  ;;  %v217_v4 = vld [vmem:[%s1093_s29] sm:$0xff]  ;;  %s1110_s23 = sld [smem:[#allocation3 + $0x80]]  ;;  %s1112_s30 = sld [smem:[#allocation3 + $0x81]]  ;;  %v983_v35 = vmov 1.0  }
  0x43   : > { %v709_v5 = vmul.f32 -1.442695, %v707_v3  ;;  %v703_v7 = vmul.f32 -1.442695, %v217_v4  ;;  %v746_v9 = vld [vmem:[%s1093_s29 + $0x28] sm:$0xff]  ;;  %v745_v11 = vld [vmem:[%s1093_s29 + $0x20] sm:$0xff] }
  0x44   : > { %v174_v1 = vand.u32 127, %v173_v0  ;;  %v748_v13 = vmul.f32 -1.442695, %v746_v9  ;;  %v362_v15 = vmul.f32 1.442695, %v707_v3  ;;  %v1106_v17 = vshrl.u32 %v173_v0, 7 }
  0x45   : > { %847 = vpow2.f32 %v709_v5  ;;  %v747_v16 = vmul.f32 -1.442695, %v745_v11  ;;  %v231_v18 = vmul.f32 1.442695, %v217_v4  ;;  %s1115_s3 = sld [smem:[#allocation3]]  ;;  %s1117_s4 = sld [smem:[#allocation3 + $0x1]] }
  0x46   : > { %v179_v2 = vcvt.s32.f32 %v174_v1  ;;  %v1101_v8 = vadd.s32 128, %v174_v1  ;;  %849 = vpow2.f32 %v703_v7  ;;  %vm200_vm0 = vcmp.eq.s32.totalorder %v1106_v17, 1  ;;  %s1124_s5 = sld [smem:[#allocation3 + $0x100]]  ;;  %s1126_s6 = sld [smem:[#allocation3 + $0x101]] }
  0x47   : > { %851 = vpow2.f32 %v748_v13  ;;  %vm201_vm1 = vcmp.eq.s32.totalorder %v1106_v17, 2  ;;  %v493_v27 = vmul.f32 1.442695, %v746_v9  ;;  %v491_v29 = vmul.f32 1.442695, %v745_v11  ;;  %p163_p12 = scmp.lt.s32.totalorder %s969_s16, 1 }
  0x48   : > { %v181_v6 = vadd.f32 0.5, %v179_v2  ;;  %v180_v12 = vcvt.s32.f32 %v1101_v8  ;;  %853 = vpow2.f32 %v747_v16  ;;  %vm202_vm2 = vmor %vm200_vm0, %vm201_vm1  ;;  %vm197_vm3 = vcmp.eq.s32.totalorder %v1106_v17, 3  ;;  %v708_v16 = vld [vmem:[%s1093_s29 + $0x18] sm:$0xff] }
  0x49   : > { %855 = vpow2.f32 %v362_v15  ;;  %v344_v32 = vstv %s1110_s23  ;;  %v345_v33 = vstv %s1112_s30  ;;  %v1131_v36 = vsel %vm202_vm2, 8.0, %v983_v35  ;;  %s1416_s16 = smov (!%p163_p12, %s969_s16), 1 }
  0x4a   : > { %v183_v10 = vmul.f32 0.0625, %v181_v6  ;;  %v182_v19 = vadd.f32 0.5, %v180_v12  ;;  %857 = vpow2.f32 %v231_v18  ;;  %v1139_v43 = vsel %vm197_vm3, %v344_v32, %v345_v33  ;;  %v218_v18 = vld [vmem:[%s1093_s29 + $0x8] sm:$0xff]  ;;  %s786_s7 = smul.u32 768, %s1416_s16 }
  0x4b   : > { %v214_v40 = vstv %s1115_s3  ;;  %v215_v41 = vstv %s1117_s4  ;;  %vm198_vm4 = vcmp.eq.s32.totalorder %v1106_v17, 4  ;;  %vm309_vm6 = vcmask 64512  }
  0x4c   : > { %v185_v14 = vfloor.f32 %v183_v10  ;;  %v184_v25 = vmul.f32 0.0625, %v182_v19  ;;  %v216_v49 = vsel %vm197_vm3, %v214_v40, %v215_v41  ;;  %vm1150_vm5 = vmor %vm197_vm3, %vm198_vm4  ;;  %v473_v55 = vstv %s1124_s5  ;;  %s1189_s10 = scalar_lea.vmem %s1403_s2, %s786_s7 }
  0x4d   : > { %v474_v56 = vstv %s1126_s6  ;;  %v710_v19 = vmul.f32 -1.442695, %v708_v16 }
  0x4e   : > { %v187_v21 = vmul.f32 16.0, %v185_v14  ;;  %v193_v28 = vmul.f32 8.0, %v185_v14  ;;  %v186_v30 = vfloor.f32 %v184_v25  ;;  %v475_v1 = vsel %vm197_vm3, %v473_v55, %v474_v56 }
  0x4f   : > { %v848_v20 = vpop.eup %847  ;;  %v233_v25 = vmul.f32 1.442695, %v218_v18 }
  0x50   : > { %v356_v22 = vadd.f32 1.0, %v848_v20  ;;  %v850_v23 = vpop.eup %849  ;;  %v189_v26 = vsub.f32 %v179_v2, %v187_v21  ;;  %v206_v39 = vsel %vm201_vm1, %v193_v28, 0.0  ;;  %v188_v44 = vmul.f32 16.0, %v186_v30 }
  0x51   : > { %v225_v24 = vadd.f32 1.0, %v850_v23  ;;  %v852_v31 = vpop.eup %851  ;;  %v194_v60 = vmul.f32 8.0, %v186_v30  ;;  %v704_v20 = vmul.f32 -1.442695, %v218_v18 }
  0x52   : > { %859 = vrcp.f32 %v356_v22  ;;  %v191_v34 = vmul.f32 8.0, %v189_v26  ;;  %v486_v37 = vadd.f32 1.0, %v852_v31  ;;  %v854_v38 = vpop.eup %853  ;;  %v190_v54 = vsub.f32 %v180_v12, %v188_v44 }
  0x53   : > { %861 = vrcp.f32 %v225_v24  ;;  %v856_v42 = vpop.eup %855  ;;  %v485_v45 = vadd.f32 1.0, %v854_v38  ;;  %v207_v4 = vsel %vm201_vm1, %v194_v60, 0.0  ;;  %v364_v24 = vmul.f32 1.442695, %v708_v16 }
  0x54   : > { %863 = vpow2.f32 %v493_v27  ;;  %v858_v46 = vpop.eup %857  ;;  %v210_v48 = vsel %vm200_vm0, %v191_v34, %v206_v39  ;;  %v366_v50 = vmul.f32 %v856_v42, %v1139_v43  ;;  %v192_v0 = vmul.f32 8.0, %v190_v54 }
  0x55   : > { %865 = vpow2.f32 %v491_v29  ;;  %v235_v58 = vmul.f32 %v858_v46, %v216_v49 }
  0x56   : > { %867 = vrcp.f32 %v486_v37  ;;  %v211_v9 = vsel %vm200_vm0, %v192_v0, %v207_v4 }
  0x57   : > { %869 = vrcp.f32 %v485_v45 }
  0x58   : > { %871 = vpow2.f32 %v710_v19 }
  0x59   : > { %873 = vpow2.f32 %v704_v20 }
  0x5c   : > { %v860_v47 = vpop.eup %859 }
  0x5d   : > { %v368_v51 = vmul.f32 %v860_v47, %v1131_v36  ;;  %v862_v52 = vpop.eup %861 }
  0x5e   : > { %v237_v59 = vmul.f32 %v862_v52, %v1131_v36  ;;  %v864_v63 = vpop.eup %863 }
  0x5f   : > { %v370_v57 = vadd.f32 %v368_v51, %v210_v48  ;;  %v866_v2 = vpop.eup %865  ;;  %v496_v6 = vmul.f32 %v864_v63, %v475_v1 }
  0x60   : > { %v239_v62 = vadd.f32 %v237_v59, %v210_v48  ;;  %v868_v5 = vpop.eup %867  ;;  %v495_v11 = vmul.f32 %v866_v2, %v475_v1 }
  0x61   : > { %v372_v61 = vsel %vm1150_vm5, %v366_v50, %v370_v57  ;;  %v498_v7 = vmul.f32 %v868_v5, %v1131_v36  ;;  %v870_v8 = vpop.eup %869 }
  0x62   : > { %374 = vxpose.xlu1.b32.start.end [1/1] (short) %v372_v61, 128  ;;  %v243_v3 = vsel %vm1150_vm5, %v235_v58, %v239_v62  ;;  %v497_v12 = vmul.f32 %v870_v8, %v1131_v36  ;;  %v872_v21 = vpop.eup %871 }
  0x63   : > { %245 = vxpose.xlu0.b32.start.end [1/1] (short) %v243_v3, 128  ;;  %v500_v10 = vadd.f32 %v498_v7, %v211_v9  ;;  %v874_v17 = vpop.eup %873  ;;  %v357_v22 = vadd.f32 1.0, %v872_v21 }
  0x64   : > { %v499_v14 = vadd.f32 %v497_v12, %v210_v48  ;;  %v226_v23 = vadd.f32 1.0, %v874_v17 }
  0x65   : > { %v502_v13 = vsel %vm1150_vm5, %v496_v6, %v500_v10  ;;  %875 = vrcp.f32 %v357_v22 }
  0x66   : > { %v501_v15 = vsel %vm1150_vm5, %v495_v11, %v499_v14  ;;  %877 = vrcp.f32 %v226_v23 }
  0x67   : > { %879 = vpow2.f32 %v364_v24 }
  0x68   : > { %881 = vpow2.f32 %v233_v25 }
  0x6f   : > { %v876_v26 = vpop.eup %875 }
  0x70   : > { %v878_v27 = vpop.eup %877  ;;  %v369_v28 = vmul.f32 %v876_v26, %v1131_v36 }
  0x71   : > { %v880_v29 = vpop.eup %879  ;;  %v238_v30 = vmul.f32 %v878_v27, %v1131_v36 }
  0x72   : > { %v882_v31 = vpop.eup %881  ;;  %v367_v32 = vmul.f32 %v880_v29, %v1139_v43  ;;  %v371_v33 = vadd.f32 %v369_v28, %v211_v9 }
  0x73   : > { %v236_v34 = vmul.f32 %v882_v31, %v216_v49  ;;  %v240_v35 = vadd.f32 %v238_v30, %v211_v9 }
  0x74   : > { %v373_v37 = vsel %vm1150_vm5, %v367_v32, %v371_v33 }
  0x75   : > { %v244_v38 = vsel %vm1150_vm5, %v236_v34, %v240_v35 }
  0x9f   : > { %406 = vxpose.xlu1.b32.start.end [1/1] (short) %v373_v37, 128 }
  0xa0   : > { %277 = vxpose.xlu0.b32.start.end [1/1] (short) %v244_v38, 128 }
  0xdc   : > { %535 = vxpose.xlu1.b32.start.end [1/1] (short) %v502_v13, 128 }
  0xdd   : > { %503 = vxpose.xlu0.b32.start.end [1/1] (short) %v501_v15, 128 }
  0xe2   : > { %v390_v36 = vpop.trf.xlu1 }
  0xe3   : > { %711 = vst.msk [vmem:[%s1189_s10 + $0x100] sm:$0xff] %vm309_vm6, %v390_v36  ;;  %v261_v39 = vpop.trf.xlu0 }
  0xe4   : > { %310 = vst.msk [vmem:[%s1189_s10] sm:$0xff] %vm309_vm6, %v261_v39 }
  0xe6   : > { %v391_v40 = vpop.trf.xlu1 }
  0xe7   : > { %712 = vst.msk [vmem:[%s1189_s10 + $0x108] sm:$0xff] %vm309_vm6, %v391_v40  ;;  %v262_v41 = vpop.trf.xlu0 }
  0xe8   : > { %311 = vst.msk [vmem:[%s1189_s10 + $0x8] sm:$0xff] %vm309_vm6, %v262_v41 }
  0xea   : > { %v392_v42 = vpop.trf.xlu1 }
  0xeb   : > { %713 = vst.msk [vmem:[%s1189_s10 + $0x110] sm:$0xff] %vm309_vm6, %v392_v42  ;;  %v263_v43 = vpop.trf.xlu0 }
  0xec   : > { %312 = vst.msk [vmem:[%s1189_s10 + $0x10] sm:$0xff] %vm309_vm6, %v263_v43 }
  0xee   : > { %v393_v44 = vpop.trf.xlu1 }
  0xef   : > { %714 = vst.msk [vmem:[%s1189_s10 + $0x118] sm:$0xff] %vm309_vm6, %v393_v44  ;;  %v264_v45 = vpop.trf.xlu0 }
  0xf0   : > { %313 = vst.msk [vmem:[%s1189_s10 + $0x18] sm:$0xff] %vm309_vm6, %v264_v45 }
  0xf2   : > { %v394_v46 = vpop.trf.xlu1 }
  0xf3   : > { %715 = vst.msk [vmem:[%s1189_s10 + $0x120] sm:$0xff] %vm309_vm6, %v394_v46  ;;  %v265_v47 = vpop.trf.xlu0 }
  0xf4   : > { %314 = vst.msk [vmem:[%s1189_s10 + $0x20] sm:$0xff] %vm309_vm6, %v265_v47 }
  0xf6   : > { %v395_v48 = vpop.trf.xlu1 }
  0xf7   : > { %716 = vst.msk [vmem:[%s1189_s10 + $0x128] sm:$0xff] %vm309_vm6, %v395_v48  ;;  %v266_v49 = vpop.trf.xlu0 }
  0xf8   : > { %315 = vst.msk [vmem:[%s1189_s10 + $0x28] sm:$0xff] %vm309_vm6, %v266_v49 }
  0xfa   : > { %v396_v50 = vpop.trf.xlu1 }
  0xfb   : > { %717 = vst.msk [vmem:[%s1189_s10 + $0x130] sm:$0xff] %vm309_vm6, %v396_v50  ;;  %v267_v51 = vpop.trf.xlu0 }
  0xfc   : > { %316 = vst.msk [vmem:[%s1189_s10 + $0x30] sm:$0xff] %vm309_vm6, %v267_v51 }
  0xfe   : > { %v397_v52 = vpop.trf.xlu1 }
  0xff   : > { %718 = vst.msk [vmem:[%s1189_s10 + $0x138] sm:$0xff] %vm309_vm6, %v397_v52  ;;  %v268_v53 = vpop.trf.xlu0 }
 0x100   : > { %317 = vst.msk [vmem:[%s1189_s10 + $0x38] sm:$0xff] %vm309_vm6, %v268_v53 }
 0x102   : > { %v398_v54 = vpop.trf.xlu1 }
 0x103   : > { %719 = vst.msk [vmem:[%s1189_s10 + $0x140] sm:$0xff] %vm309_vm6, %v398_v54  ;;  %v269_v55 = vpop.trf.xlu0 }
 0x104   : > { %318 = vst.msk [vmem:[%s1189_s10 + $0x40] sm:$0xff] %vm309_vm6, %v269_v55 }
 0x106   : > { %v399_v56 = vpop.trf.xlu1 }
 0x107   : > { %720 = vst.msk [vmem:[%s1189_s10 + $0x148] sm:$0xff] %vm309_vm6, %v399_v56  ;;  %v270_v57 = vpop.trf.xlu0 }
 0x108   : > { %319 = vst.msk [vmem:[%s1189_s10 + $0x48] sm:$0xff] %vm309_vm6, %v270_v57 }
 0x10a   : > { %v400_v58 = vpop.trf.xlu1 }
 0x10b   : > { %721 = vst.msk [vmem:[%s1189_s10 + $0x150] sm:$0xff] %vm309_vm6, %v400_v58  ;;  %v271_v59 = vpop.trf.xlu0 }
 0x10c   : > { %320 = vst.msk [vmem:[%s1189_s10 + $0x50] sm:$0xff] %vm309_vm6, %v271_v59 }
 0x10e   : > { %v401_v60 = vpop.trf.xlu1 }
 0x10f   : > { %722 = vst.msk [vmem:[%s1189_s10 + $0x158] sm:$0xff] %vm309_vm6, %v401_v60  ;;  %v272_v61 = vpop.trf.xlu0 }
 0x110   : > { %321 = vst.msk [vmem:[%s1189_s10 + $0x58] sm:$0xff] %vm309_vm6, %v272_v61 }
 0x112   : > { %v402_v62 = vpop.trf.xlu1 }
 0x113   : > { %723 = vst.msk [vmem:[%s1189_s10 + $0x160] sm:$0xff] %vm309_vm6, %v402_v62  ;;  %v273_v63 = vpop.trf.xlu0 }
 0x114   : > { %322 = vst.msk [vmem:[%s1189_s10 + $0x60] sm:$0xff] %vm309_vm6, %v273_v63 }
 0x116   : > { %v403_v0 = vpop.trf.xlu1 }
 0x117   : > { %724 = vst.msk [vmem:[%s1189_s10 + $0x168] sm:$0xff] %vm309_vm6, %v403_v0  ;;  %v274_v1 = vpop.trf.xlu0 }
 0x118   : > { %323 = vst.msk [vmem:[%s1189_s10 + $0x68] sm:$0xff] %vm309_vm6, %v274_v1 }
 0x11a   : > { %v404_v2 = vpop.trf.xlu1 }
 0x11b   : > { %725 = vst.msk [vmem:[%s1189_s10 + $0x170] sm:$0xff] %vm309_vm6, %v404_v2  ;;  %v275_v3 = vpop.trf.xlu0 }
 0x11c   : > { %324 = vst.msk [vmem:[%s1189_s10 + $0x70] sm:$0xff] %vm309_vm6, %v275_v3 }
 0x11e   : > { %v405_v4 = vpop.trf.xlu1 }
 0x11f   : > { %726 = vst.msk [vmem:[%s1189_s10 + $0x178] sm:$0xff] %vm309_vm6, %v405_v4  ;;  %v276_v5 = vpop.trf.xlu0 }
 0x120   : > { %325 = vst.msk [vmem:[%s1189_s10 + $0x78] sm:$0xff] %vm309_vm6, %v276_v5 }
 0x122   : > { %v422_v6 = vpop.trf.xlu1 }
 0x123   : > { %727 = vst.msk [vmem:[%s1189_s10 + $0x180] sm:$0xff] %vm309_vm6, %v422_v6  ;;  %v293_v7 = vpop.trf.xlu0 }
 0x124   : > { %326 = vst.msk [vmem:[%s1189_s10 + $0x80] sm:$0xff] %vm309_vm6, %v293_v7 }
 0x126   : > { %v423_v8 = vpop.trf.xlu1 }
 0x127   : > { %728 = vst.msk [vmem:[%s1189_s10 + $0x188] sm:$0xff] %vm309_vm6, %v423_v8  ;;  %v294_v9 = vpop.trf.xlu0 }
 0x128   : > { %327 = vst.msk [vmem:[%s1189_s10 + $0x88] sm:$0xff] %vm309_vm6, %v294_v9 }
 0x12a   : > { %v424_v10 = vpop.trf.xlu1 }
 0x12b   : > { %729 = vst.msk [vmem:[%s1189_s10 + $0x190] sm:$0xff] %vm309_vm6, %v424_v10  ;;  %v295_v11 = vpop.trf.xlu0 }
 0x12c   : > { %328 = vst.msk [vmem:[%s1189_s10 + $0x90] sm:$0xff] %vm309_vm6, %v295_v11 }
 0x12e   : > { %v425_v12 = vpop.trf.xlu1 }
 0x12f   : > { %730 = vst.msk [vmem:[%s1189_s10 + $0x198] sm:$0xff] %vm309_vm6, %v425_v12  ;;  %v296_v13 = vpop.trf.xlu0 }
 0x130   : > { %329 = vst.msk [vmem:[%s1189_s10 + $0x98] sm:$0xff] %vm309_vm6, %v296_v13 }
 0x132   : > { %v426_v14 = vpop.trf.xlu1 }
 0x133   : > { %731 = vst.msk [vmem:[%s1189_s10 + $0x1a0] sm:$0xff] %vm309_vm6, %v426_v14  ;;  %v297_v15 = vpop.trf.xlu0 }
 0x134   : > { %330 = vst.msk [vmem:[%s1189_s10 + $0xa0] sm:$0xff] %vm309_vm6, %v297_v15 }
 0x136   : > { %v427_v16 = vpop.trf.xlu1 }
 0x137   : > { %732 = vst.msk [vmem:[%s1189_s10 + $0x1a8] sm:$0xff] %vm309_vm6, %v427_v16  ;;  %v298_v18 = vpop.trf.xlu0 }
 0x138   : > { %331 = vst.msk [vmem:[%s1189_s10 + $0xa8] sm:$0xff] %vm309_vm6, %v298_v18 }
 0x13a   : > { %v428_v19 = vpop.trf.xlu1 }
 0x13b   : > { %733 = vst.msk [vmem:[%s1189_s10 + $0x1b0] sm:$0xff] %vm309_vm6, %v428_v19  ;;  %v299_v20 = vpop.trf.xlu0 }
 0x13c   : > { %332 = vst.msk [vmem:[%s1189_s10 + $0xb0] sm:$0xff] %vm309_vm6, %v299_v20 }
 0x13e   : > { %v429_v21 = vpop.trf.xlu1 }
 0x13f   : > { %734 = vst.msk [vmem:[%s1189_s10 + $0x1b8] sm:$0xff] %vm309_vm6, %v429_v21  ;;  %v300_v17 = vpop.trf.xlu0 }
 0x140   : > { %333 = vst.msk [vmem:[%s1189_s10 + $0xb8] sm:$0xff] %vm309_vm6, %v300_v17 }
 0x142   : > { %v430_v22 = vpop.trf.xlu1 }
 0x143   : > { %735 = vst.msk [vmem:[%s1189_s10 + $0x1c0] sm:$0xff] %vm309_vm6, %v430_v22  ;;  %v301_v23 = vpop.trf.xlu0 }
 0x144   : > { %334 = vst.msk [vmem:[%s1189_s10 + $0xc0] sm:$0xff] %vm309_vm6, %v301_v23 }
 0x146   : > { %v431_v24 = vpop.trf.xlu1 }
 0x147   : > { %736 = vst.msk [vmem:[%s1189_s10 + $0x1c8] sm:$0xff] %vm309_vm6, %v431_v24  ;;  %v302_v25 = vpop.trf.xlu0 }
 0x148   : > { %335 = vst.msk [vmem:[%s1189_s10 + $0xc8] sm:$0xff] %vm309_vm6, %v302_v25 }
 0x14a   : > { %v432_v26 = vpop.trf.xlu1 }
 0x14b   : > { %737 = vst.msk [vmem:[%s1189_s10 + $0x1d0] sm:$0xff] %vm309_vm6, %v432_v26  ;;  %v303_v27 = vpop.trf.xlu0 }
 0x14c   : > { %336 = vst.msk [vmem:[%s1189_s10 + $0xd0] sm:$0xff] %vm309_vm6, %v303_v27 }
 0x14e   : > { %v433_v28 = vpop.trf.xlu1 }
 0x14f   : > { %738 = vst.msk [vmem:[%s1189_s10 + $0x1d8] sm:$0xff] %vm309_vm6, %v433_v28  ;;  %v304_v29 = vpop.trf.xlu0 }
 0x150   : > { %337 = vst.msk [vmem:[%s1189_s10 + $0xd8] sm:$0xff] %vm309_vm6, %v304_v29 }
 0x152   : > { %v434_v30 = vpop.trf.xlu1 }
 0x153   : > { %739 = vst.msk [vmem:[%s1189_s10 + $0x1e0] sm:$0xff] %vm309_vm6, %v434_v30  ;;  %v305_v31 = vpop.trf.xlu0 }
 0x154   : > { %338 = vst.msk [vmem:[%s1189_s10 + $0xe0] sm:$0xff] %vm309_vm6, %v305_v31 }
 0x156   : > { %v435_v32 = vpop.trf.xlu1 }
 0x157   : > { %740 = vst.msk [vmem:[%s1189_s10 + $0x1e8] sm:$0xff] %vm309_vm6, %v435_v32  ;;  %v306_v33 = vpop.trf.xlu0 }
 0x158   : > { %339 = vst.msk [vmem:[%s1189_s10 + $0xe8] sm:$0xff] %vm309_vm6, %v306_v33 }
 0x15a   : > { %v436_v34 = vpop.trf.xlu1 }
 0x15b   : > { %741 = vst.msk [vmem:[%s1189_s10 + $0x1f0] sm:$0xff] %vm309_vm6, %v436_v34  ;;  %v307_v35 = vpop.trf.xlu0 }
 0x15c   : > { %340 = vst.msk [vmem:[%s1189_s10 + $0xf0] sm:$0xff] %vm309_vm6, %v307_v35 }
 0x15e   : > { %v437_v37 = vpop.trf.xlu1 }
 0x15f   : > { %742 = vst.msk [vmem:[%s1189_s10 + $0x1f8] sm:$0xff] %vm309_vm6, %v437_v37  ;;  %v308_v38 = vpop.trf.xlu0 }
 0x160   : > { %341 = vst.msk [vmem:[%s1189_s10 + $0xf8] sm:$0xff] %vm309_vm6, %v308_v38 }
 0x162   : > { %v551_v36 = vpop.trf.xlu1 }
 0x163   : > { %765 = vst.msk [vmem:[%s1189_s10 + $0x280] sm:$0xff] %vm309_vm6, %v551_v36  ;;  %v519_v39 = vpop.trf.xlu0 }
 0x164   : > { %749 = vst.msk [vmem:[%s1189_s10 + $0x200] sm:$0xff] %vm309_vm6, %v519_v39 }
 0x166   : > { %v552_v40 = vpop.trf.xlu1 }
 0x167   : > { %766 = vst.msk [vmem:[%s1189_s10 + $0x288] sm:$0xff] %vm309_vm6, %v552_v40  ;;  %v520_v41 = vpop.trf.xlu0 }
 0x168   : > { %750 = vst.msk [vmem:[%s1189_s10 + $0x208] sm:$0xff] %vm309_vm6, %v520_v41 }
 0x16a   : > { %v553_v42 = vpop.trf.xlu1 }
 0x16b   : > { %767 = vst.msk [vmem:[%s1189_s10 + $0x290] sm:$0xff] %vm309_vm6, %v553_v42  ;;  %v521_v43 = vpop.trf.xlu0 }
 0x16c   : > { %751 = vst.msk [vmem:[%s1189_s10 + $0x210] sm:$0xff] %vm309_vm6, %v521_v43 }
 0x16e   : > { %v554_v44 = vpop.trf.xlu1 }
 0x16f   : > { %768 = vst.msk [vmem:[%s1189_s10 + $0x298] sm:$0xff] %vm309_vm6, %v554_v44  ;;  %v522_v45 = vpop.trf.xlu0 }
 0x170   : > { %752 = vst.msk [vmem:[%s1189_s10 + $0x218] sm:$0xff] %vm309_vm6, %v522_v45 }
 0x172   : > { %v555_v46 = vpop.trf.xlu1 }
 0x173   : > { %769 = vst.msk [vmem:[%s1189_s10 + $0x2a0] sm:$0xff] %vm309_vm6, %v555_v46  ;;  %v523_v47 = vpop.trf.xlu0 }
 0x174   : > { %753 = vst.msk [vmem:[%s1189_s10 + $0x220] sm:$0xff] %vm309_vm6, %v523_v47 }
 0x176   : > { %v556_v48 = vpop.trf.xlu1 }
 0x177   : > { %770 = vst.msk [vmem:[%s1189_s10 + $0x2a8] sm:$0xff] %vm309_vm6, %v556_v48  ;;  %v524_v49 = vpop.trf.xlu0 }
 0x178   : > { %754 = vst.msk [vmem:[%s1189_s10 + $0x228] sm:$0xff] %vm309_vm6, %v524_v49 }
 0x17a   : > { %v557_v50 = vpop.trf.xlu1 }
 0x17b   : > { %771 = vst.msk [vmem:[%s1189_s10 + $0x2b0] sm:$0xff] %vm309_vm6, %v557_v50  ;;  %v525_v51 = vpop.trf.xlu0 }
 0x17c   : > { %755 = vst.msk [vmem:[%s1189_s10 + $0x230] sm:$0xff] %vm309_vm6, %v525_v51 }
 0x17e   : > { %v558_v52 = vpop.trf.xlu1 }
 0x17f   : > { %772 = vst.msk [vmem:[%s1189_s10 + $0x2b8] sm:$0xff] %vm309_vm6, %v558_v52  ;;  %v526_v53 = vpop.trf.xlu0 }
 0x180   : > { %756 = vst.msk [vmem:[%s1189_s10 + $0x238] sm:$0xff] %vm309_vm6, %v526_v53 }
 0x182   : > { %v559_v54 = vpop.trf.xlu1 }
 0x183   : > { %773 = vst.msk [vmem:[%s1189_s10 + $0x2c0] sm:$0xff] %vm309_vm6, %v559_v54  ;;  %v527_v55 = vpop.trf.xlu0 }
 0x184   : > { %757 = vst.msk [vmem:[%s1189_s10 + $0x240] sm:$0xff] %vm309_vm6, %v527_v55 }
 0x186   : > { %v560_v56 = vpop.trf.xlu1 }
 0x187   : > { %774 = vst.msk [vmem:[%s1189_s10 + $0x2c8] sm:$0xff] %vm309_vm6, %v560_v56  ;;  %v528_v57 = vpop.trf.xlu0 }
 0x188   : > { %758 = vst.msk [vmem:[%s1189_s10 + $0x248] sm:$0xff] %vm309_vm6, %v528_v57 }
 0x18a   : > { %v561_v58 = vpop.trf.xlu1 }
 0x18b   : > { %775 = vst.msk [vmem:[%s1189_s10 + $0x2d0] sm:$0xff] %vm309_vm6, %v561_v58  ;;  %v529_v59 = vpop.trf.xlu0 }
 0x18c   : > { %759 = vst.msk [vmem:[%s1189_s10 + $0x250] sm:$0xff] %vm309_vm6, %v529_v59 }
 0x18e   : > { %v562_v60 = vpop.trf.xlu1 }
 0x18f   : > { %776 = vst.msk [vmem:[%s1189_s10 + $0x2d8] sm:$0xff] %vm309_vm6, %v562_v60  ;;  %v530_v61 = vpop.trf.xlu0 }
 0x190   : > { %760 = vst.msk [vmem:[%s1189_s10 + $0x258] sm:$0xff] %vm309_vm6, %v530_v61 }
 0x192   : > { %v563_v62 = vpop.trf.xlu1 }
 0x193   : > { %777 = vst.msk [vmem:[%s1189_s10 + $0x2e0] sm:$0xff] %vm309_vm6, %v563_v62  ;;  %v531_v63 = vpop.trf.xlu0 }
 0x194   : > { %761 = vst.msk [vmem:[%s1189_s10 + $0x260] sm:$0xff] %vm309_vm6, %v531_v63 }
 0x196   : > { %v564_v0 = vpop.trf.xlu1 }
 0x197   : > { %778 = vst.msk [vmem:[%s1189_s10 + $0x2e8] sm:$0xff] %vm309_vm6, %v564_v0  ;;  %v532_v1 = vpop.trf.xlu0 }
 0x198   : > { %762 = vst.msk [vmem:[%s1189_s10 + $0x268] sm:$0xff] %vm309_vm6, %v532_v1 }
 0x19a   : > { %v565_v2 = vpop.trf.xlu1 }
 0x19b   : > { %779 = vst.msk [vmem:[%s1189_s10 + $0x2f0] sm:$0xff] %vm309_vm6, %v565_v2  ;;  %v533_v3 = vpop.trf.xlu0 }
 0x19c   : > { %763 = vst.msk [vmem:[%s1189_s10 + $0x270] sm:$0xff] %vm309_vm6, %v533_v3 }
 0x19e   : > { %v566_v4 = vpop.trf.xlu1 }
 0x19f   : > { %780 = vst.msk [vmem:[%s1189_s10 + $0x2f8] sm:$0xff] %vm309_vm6, %v566_v4  ;;  %v534_v5 = vpop.trf.xlu0 }
 0x1a0   : > { %764 = vst.msk [vmem:[%s1189_s10 + $0x278] sm:$0xff] %vm309_vm6, %v534_v5 }
 0x1a1 PF: > { %s21_s18 = sadd.s32 1, %s977_s18   ;;  %s1408_s14 = smov %s961_s15 }
 0x1a2   : > { %p18_p0 = scmp.ge.s32.totalorder %s21_s18, 4   ;;  %s1409_s15 = smov %s965_s0 }
 0x1a3   : > { %s1410_s0 = smov %s1047_s24  ;;  %s1411_s16 = smov %s973_s17 }
 0x1a4   : > { %s1412_s17 = smov %s1414_s20  ;;  %20 = sbr.rel (!%p18_p0) target bundleno = 19 (0x13), region = 68 }
 0x1ab   :  { %630 = vsyncpa [#allocation5], 1 }
 0x1ac   :  { %632 = vsyncpa [#allocation5 + $0x1], 1 }

</bundles_post_ra>
